<compile_context>
chip_gen: v5e
topology: v5e:2x2
jax: 0.10.0
libtpu: 0.0.40
codegen_flags: <defaults>
</compile_context>

<pallas_src>
import jax
import jax.numpy as jnp
from jax.experimental import pallas as pl
from jax.experimental.pallas import tpu as pltpu


def _action_net_kernel(xT_ref, w_ref, b_ref, bits_ref, g_ref,
                       action_ref, policyT_ref, logp_ref, ent_ref):
    xT = xT_ref[...]          # (D, TB) f32   batch on the lane axis
    w = w_ref[...]            # (A, D)  f32   torch nn.Linear layout, resident
    b = b_ref[...]            # (A, 1)  f32   resident
    bits = bits_ref[...]      # (1, TB) int32 bit-packed action mask
    g = g_ref[...]            # (A, TB) f32   Gumbel noise

    a_dim, tb = g.shape
    a_iota = jax.lax.broadcasted_iota(jnp.int32, (a_dim, tb), 0)
    mask = ((bits >> a_iota) & 1) != 0                      # (A, TB) bool

    # fc_action (transposed): logits^T = W @ x^T + b
    logits = jax.lax.dot_general(
        w, xT, (((1,), (0,)), ((), ())),
        preferred_element_type=jnp.float32) + b             # (A, TB)

    # CategoricalMasked: masked actions get a very negative *finite* logit
    # (-1e30 gives the identical f32 softmax/entropy as finfo.min but cannot
    #  overflow to -inf and poison log_prob with 0*inf NaNs).
    neg_big = jnp.float32(-1e30)
    logits = jnp.where(mask, logits, neg_big)

    # softmax / log_softmax along the action (sublane) axis; exp reused.
    m = jnp.max(logits, axis=0, keepdims=True)              # (1, TB)
    z = logits - m
    e = jnp.exp(z)
    sum_e = jnp.sum(e, axis=0, keepdims=True)               # (1, TB)
    norm = z - jnp.log(sum_e)                               # normalized log-probs
    probs = e / sum_e
    policyT_ref[...] = probs

    # Gumbel-max sample (ties break to the lowest action index).
    perturbed = logits + g
    pmax = jnp.max(perturbed, axis=0, keepdims=True)
    action = jnp.min(jnp.where(perturbed == pmax, a_iota, jnp.int32(a_dim)),
                     axis=0, keepdims=True)                 # (1, TB) int32
    action_ref[...] = action

    # dist.log_prob(action): select-then-sum gather (no 0 * (-inf) hazards).
    logp_ref[...] = jnp.sum(
        jnp.where(a_iota == action, norm, jnp.float32(0.0)),
        axis=0, keepdims=True)

    # CategoricalMasked.entropy()
    p_log_p = jnp.where(mask, norm * probs, jnp.float32(0.0))
    ent_ref[...] = -jnp.sum(p_log_p, axis=0, keepdims=True)


def _round_up(n, m):
    return ((n + m - 1) // m) * m


def action_net_forward(x, weight, bias, mask, seed, *, block_b=1024):
    """ActionNet forward.

    x: (B, D) f32, weight: (A, D) f32 (torch nn.Linear layout), bias: (A,) f32,
    mask: (B, A) bool or None, seed: python int for the Gumbel sampling noise.
    Returns (action (B,) int32, policy (B, A) f32, log_prob (B,), entropy (B,)).
    """
    B, D = x.shape
    A = weight.shape[0]
    assert A <= 32, "bit-packed mask path supports at most 32 actions"

    # Batch tile: multiple of 128 (lane-dense stores), large enough to
    # amortize the ~0.35us/grid-step overhead, capped at ceil(B/2) rounded to
    # 128 so big batches keep >= 2 grid steps for v7x two-core sharding.
    block_b = max(128, _round_up(block_b, 128))
    tb = min(block_b, max(128, _round_up((B + 1) // 2, 128)))
    b_pad = _round_up(B, tb)
    grid = (b_pad // tb,)

    # x -> (D, b_pad): batch on the lane axis for action-major compute.
    x_f = x.astype(jnp.float32)
    if b_pad != B:
        x_f = jnp.pad(x_f, ((0, b_pad - B), (0, 0)))
    xT = x_f.T

    # Mask -> (1, b_pad) int32 bitfield (bit a = action a valid).
    pow2 = jnp.left_shift(jnp.int32(1), jnp.arange(A, dtype=jnp.int32))
    if mask is None:
        mask_i = jnp.ones((B, A), dtype=jnp.int32)
    else:
        mask_i = mask.astype(jnp.int32)
    bits = jnp.sum(mask_i * pow2[None, :], axis=-1).astype(jnp.int32)
    pad_bits = -1 if A >= 32 else (1 << A) - 1   # pad rows: all-valid (NaN-free)
    if b_pad != B:
        bits = jnp.pad(bits, (0, b_pad - B), constant_values=pad_bits)
    bits = bits.reshape(1, b_pad)

    w_f = weight.astype(jnp.float32)                  # (A, D), used as-is
    b_f = bias.astype(jnp.float32).reshape(A, 1)      # (A, 1)

    # Gumbel noise for dist.sample(), lane-dense (A, b_pad).
    g = jax.random.gumbel(jax.random.PRNGKey(seed), (A, b_pad),
                          dtype=jnp.float32)

    cost = pl.CostEstimate(
        flops=2 * b_pad * D * A,
        transcendentals=b_pad * (A + 1),                       # exp + log
        bytes_accessed=4 * (b_pad * D + A * D + A + b_pad      # x, W, b, bits
                            + 2 * b_pad * A + 3 * b_pad))      # g, policy, scalars

    action, policyT, log_prob, entropy = pl.pallas_call(
        _action_net_kernel,
        out_shape=(
            jax.ShapeDtypeStruct((1, b_pad), jnp.int32),
            jax.ShapeDtypeStruct((A, b_pad), jnp.float32),
            jax.ShapeDtypeStruct((1, b_pad), jnp.float32),
            jax.ShapeDtypeStruct((1, b_pad), jnp.float32),
        ),
        grid_spec=pltpu.PrefetchScalarGridSpec(
            num_scalar_prefetch=0,
            grid=grid,
            in_specs=[
                pl.BlockSpec((D, tb), lambda i: (0, i)),   # x^T tile
                pl.BlockSpec((A, D), lambda i: (0, 0)),    # resident W
                pl.BlockSpec((A, 1), lambda i: (0, 0)),    # resident bias
                pl.BlockSpec((1, tb), lambda i: (0, i)),   # packed mask bits
                pl.BlockSpec((A, tb), lambda i: (0, i)),   # gumbel noise
            ],
            out_specs=(
                pl.BlockSpec((1, tb), lambda i: (0, i)),   # action
                pl.BlockSpec((A, tb), lambda i: (0, i)),   # policy^T
                pl.BlockSpec((1, tb), lambda i: (0, i)),   # log_prob
                pl.BlockSpec((1, tb), lambda i: (0, i)),   # entropy
            ),
        ),
        compiler_params=pltpu.CompilerParams(
            dimension_semantics=("parallel",),             # batch across TCs
        ),
        cost_estimate=cost,
    )(xT, w_f, b_f, bits, g)

    policy = policyT.T[:B]                                 # back to (B, A)
    return (action[0, :B], policy, log_prob[0, :B], entropy[0, :B])


def _reference_check(x, weight, bias, mask, outs):
    action, policy, log_prob, entropy = outs
    B, A = policy.shape
    assert action.shape == (B,) and log_prob.shape == (B,) and entropy.shape == (B,)
    # Kernel-internal consistency (tight).
    assert bool(jnp.all(jnp.abs(policy.sum(axis=-1) - 1.0) < 1e-4))
    assert bool(jnp.all(policy[~mask] < 1e-6))
    assert bool(jnp.all(jnp.take_along_axis(mask, action[:, None], axis=-1)))
    picked = jnp.take_along_axis(policy, action[:, None], axis=-1)[:, 0]
    assert bool(jnp.allclose(log_prob, jnp.log(picked), atol=1e-4))
    # Pure-JAX reference (loose tolerance: MXU f32 matmul precision).
    logits = jnp.where(mask, x @ weight.T + bias, jnp.float32(-1e30))
    ref_norm = jax.nn.log_softmax(logits, axis=-1)
    ref_policy = jnp.exp(ref_norm)
    ref_logp = jnp.take_along_axis(ref_norm, action[:, None], axis=-1)[:, 0]
    ref_ent = -jnp.sum(jnp.where(mask, ref_norm * ref_policy, 0.0), axis=-1)
    assert bool(jnp.allclose(policy, ref_policy, atol=2e-2))
    assert bool(jnp.allclose(log_prob, ref_logp, atol=2e-2))
    assert bool(jnp.allclose(entropy, ref_ent, atol=2e-2))


if __name__ == "__main__":
    D, A = 32, 16
    key = jax.random.PRNGKey(0)
    kw, kb, kx1, km1, kx2, km2, kx3 = jax.random.split(key, 7)

    # nn.Linear(input_dim, output_dim)-style deterministic init.
    bound = 1.0 / (D ** 0.5)
    weight = jax.random.uniform(kw, (A, D), minval=-bound, maxval=bound,
                                dtype=jnp.float32)
    bias = jax.random.uniform(kb, (A,), minval=-bound, maxval=bound,
                              dtype=jnp.float32)

    # Case 1: small single-tile batch with a mask.
    B1 = 8
    x1 = jax.random.normal(kx1, (B1, D), dtype=jnp.float32)
    mask1 = jax.random.uniform(km1, (B1, A)) > 0.3
    mask1 = mask1.at[:, 0].set(True)            # >=1 valid action per row
    outs1 = action_net_forward(x1, weight, bias, mask1, seed=1234)
    jax.block_until_ready(outs1)
    _reference_check(x1, weight, bias, mask1, outs1)

    # Case 2: multi-tile padded batch (B=300, 128-row tiles -> 3 grid steps)
    # exercising the batch grid, resident-weight index_map and padding path.
    B2 = 300
    x2 = jax.random.normal(kx2, (B2, D), dtype=jnp.float32)
    mask2 = jax.random.uniform(km2, (B2, A)) > 0.5
    mask2 = mask2.at[:, 3].set(True)
    outs2 = action_net_forward(x2, weight, bias, mask2, seed=7, block_b=128)
    jax.block_until_ready(outs2)
    _reference_check(x2, weight, bias, mask2, outs2)

    # Case 3: mask=None path (plain Categorical).
    B3 = 5
    x3 = jax.random.normal(kx3, (B3, D), dtype=jnp.float32)
    outs3 = action_net_forward(x3, weight, bias, None, seed=42)
    jax.block_until_ready(outs3)
    _reference_check(x3, weight, bias, jnp.ones((B3, A), dtype=bool), outs3)

    print("KERNEL_OK")
</pallas_src>

<mosaic_0001>
module attributes {stable_mosaic.version = 11 : i64} {
  func.func @_action_net_kernel(%arg0: i32, %arg1: memref<32x128xf32, #tpu.memory_space<vmem>>, %arg2: memref<16x32xf32, #tpu.memory_space<vmem>>, %arg3: memref<16x1xf32, #tpu.memory_space<vmem>>, %arg4: memref<1x128xi32, #tpu.memory_space<vmem>>, %arg5: memref<16x128xf32, #tpu.memory_space<vmem>>, %arg6: memref<1x128xi32, #tpu.memory_space<vmem>>, %arg7: memref<16x128xf32, #tpu.memory_space<vmem>>, %arg8: memref<1x128xf32, #tpu.memory_space<vmem>>, %arg9: memref<1x128xf32, #tpu.memory_space<vmem>>) attributes {dimension_semantics = [#tpu.dimension_semantics<parallel>], iteration_bounds = array<i64: 1>, scalar_prefetch = 0 : i64, scratch_operands = 0 : i64, tpu.core_type = #tpu.core_type<tc>, window_params = [{transform_indices = @transform_0, window_bounds = array<i64: 32, 128>}, {pipeline_mode = #tpu.pipeline_mode<synchronous>, transform_indices = @transform_1, window_bounds = array<i64: 16, 32>}, {pipeline_mode = #tpu.pipeline_mode<synchronous>, transform_indices = @transform_2, window_bounds = array<i64: 16, 1>}, {transform_indices = @transform_3, window_bounds = array<i64: 1, 128>}, {transform_indices = @transform_4, window_bounds = array<i64: 16, 128>}, {transform_indices = @transform_5, window_bounds = array<i64: 1, 128>}, {transform_indices = @transform_6, window_bounds = array<i64: 16, 128>}, {transform_indices = @transform_7, window_bounds = array<i64: 1, 128>}, {transform_indices = @transform_8, window_bounds = array<i64: 1, 128>}]} {
    %c0 = arith.constant 0 : index
    %c0_0 = arith.constant 0 : index
    %0 = vector.load %arg1[%c0, %c0_0] : memref<32x128xf32, #tpu.memory_space<vmem>>, vector<32x128xf32>
    %c0_1 = arith.constant 0 : index
    %c0_2 = arith.constant 0 : index
    %1 = vector.load %arg2[%c0_1, %c0_2] : memref<16x32xf32, #tpu.memory_space<vmem>>, vector<16x32xf32>
    %c0_3 = arith.constant 0 : index
    %c0_4 = arith.constant 0 : index
    %2 = vector.load %arg3[%c0_3, %c0_4] : memref<16x1xf32, #tpu.memory_space<vmem>>, vector<16x1xf32>
    %c0_5 = arith.constant 0 : index
    %c0_6 = arith.constant 0 : index
    %3 = vector.load %arg4[%c0_5, %c0_6] : memref<1x128xi32, #tpu.memory_space<vmem>>, vector<1x128xi32>
    %c0_7 = arith.constant 0 : index
    %c0_8 = arith.constant 0 : index
    %4 = vector.load %arg5[%c0_7, %c0_8] : memref<16x128xf32, #tpu.memory_space<vmem>>, vector<16x128xf32>
    %5 = tpu.iota {dimensions = array<i32: 0>} : vector<16x128xi32>
    %6 = vector.broadcast %3 : vector<1x128xi32> to vector<16x128xi32>
    %7 = arith.shrsi %6, %5 : vector<16x128xi32>
    %c1_i32 = arith.constant 1 : i32
    %8 = vector.broadcast %c1_i32 : i32 to vector<16x128xi32>
    %9 = arith.andi %7, %8 : vector<16x128xi32>
    %c0_i32 = arith.constant 0 : i32
    %10 = vector.broadcast %c0_i32 : i32 to vector<16x128xi32>
    %11 = arith.cmpi ne, %9, %10 : vector<16x128xi32>
    %cst = arith.constant dense<0.000000e+00> : vector<16x128xf32>
    %12 = tpu.matmul %1, %0, %cst {dimension_numbers = #tpu.dot_dimension_numbers<[1], [0], [0], [1], [0, 0, 1, 1], [], []>} : vector<16x32xf32>, vector<32x128xf32>, vector<16x128xf32> -> vector<16x128xf32>
    %13 = vector.broadcast %2 : vector<16x1xf32> to vector<16x128xf32>
    %14 = arith.addf %12, %13 : vector<16x128xf32>
    %cst_9 = arith.constant -1.000000e+30 : f32
    %15 = vector.broadcast %cst_9 : f32 to vector<16x128xf32>
    %16 = arith.select %11, %14, %15 : vector<16x128xi1>, vector<16x128xf32>
    %cst_10 = arith.constant dense<0xFF800000> : vector<128xf32>
    %17 = vector.multi_reduction <maximumf>, %16, %cst_10 [0] : vector<16x128xf32> to vector<128xf32>
    %18 = vector.shape_cast %17 : vector<128xf32> to vector<1x128xf32>
    %19 = vector.broadcast %18 : vector<1x128xf32> to vector<16x128xf32>
    %20 = arith.subf %16, %19 : vector<16x128xf32>
    %21 = math.exp %20 : vector<16x128xf32>
    %cst_11 = arith.constant dense<0.000000e+00> : vector<128xf32>
    %22 = vector.multi_reduction <add>, %21, %cst_11 [0] : vector<16x128xf32> to vector<128xf32>
    %23 = vector.shape_cast %22 : vector<128xf32> to vector<1x128xf32>
    %24 = math.log %23 : vector<1x128xf32>
    %25 = vector.broadcast %24 : vector<1x128xf32> to vector<16x128xf32>
    %26 = arith.subf %20, %25 : vector<16x128xf32>
    %27 = vector.broadcast %23 : vector<1x128xf32> to vector<16x128xf32>
    %28 = arith.divf %21, %27 : vector<16x128xf32>
    %c0_12 = arith.constant 0 : index
    %c0_13 = arith.constant 0 : index
    %29 = vector.load %arg7[%c0_12, %c0_13] : memref<16x128xf32, #tpu.memory_space<vmem>>, vector<16x128xf32>
    tpu.vector_store %arg7[%c0_12, %c0_13], %28 {strides = array<i32>} : memref<16x128xf32, #tpu.memory_space<vmem>>, vector<16x128xf32>,
    %30 = arith.addf %16, %4 : vector<16x128xf32>
    %cst_14 = arith.constant dense<0xFF800000> : vector<128xf32>
    %31 = vector.multi_reduction <maximumf>, %30, %cst_14 [0] : vector<16x128xf32> to vector<128xf32>
    %32 = vector.shape_cast %31 : vector<128xf32> to vector<1x128xf32>
    %33 = vector.broadcast %32 : vector<1x128xf32> to vector<16x128xf32>
    %34 = arith.cmpf oeq, %30, %33 : vector<16x128xf32>
    %c16_i32 = arith.constant 16 : i32
    %35 = vector.broadcast %c16_i32 : i32 to vector<16x128xi32>
    %36 = arith.select %34, %5, %35 : vector<16x128xi1>, vector<16x128xi32>
    %cst_15 = arith.constant dense<2147483647> : vector<128xi32>
    %37 = vector.multi_reduction <minsi>, %36, %cst_15 [0] : vector<16x128xi32> to vector<128xi32>
    %38 = vector.shape_cast %37 : vector<128xi32> to vector<1x128xi32>
    %c0_16 = arith.constant 0 : index
    %c0_17 = arith.constant 0 : index
    %39 = vector.load %arg6[%c0_16, %c0_17] : memref<1x128xi32, #tpu.memory_space<vmem>>, vector<1x128xi32>
    tpu.vector_store %arg6[%c0_16, %c0_17], %38 {strides = array<i32>} : memref<1x128xi32, #tpu.memory_space<vmem>>, vector<1x128xi32>,
    %40 = vector.broadcast %38 : vector<1x128xi32> to vector<16x128xi32>
    %41 = arith.cmpi eq, %5, %40 : vector<16x128xi32>
    %cst_18 = arith.constant 0.000000e+00 : f32
    %42 = vector.broadcast %cst_18 : f32 to vector<16x128xf32>
    %43 = arith.select %41, %26, %42 : vector<16x128xi1>, vector<16x128xf32>
    %cst_19 = arith.constant dense<0.000000e+00> : vector<128xf32>
    %44 = vector.multi_reduction <add>, %43, %cst_19 [0] : vector<16x128xf32> to vector<128xf32>
    %45 = vector.shape_cast %44 : vector<128xf32> to vector<1x128xf32>
    %c0_20 = arith.constant 0 : index
    %c0_21 = arith.constant 0 : index
    %46 = vector.load %arg8[%c0_20, %c0_21] : memref<1x128xf32, #tpu.memory_space<vmem>>, vector<1x128xf32>
    tpu.vector_store %arg8[%c0_20, %c0_21], %45 {strides = array<i32>} : memref<1x128xf32, #tpu.memory_space<vmem>>, vector<1x128xf32>,
    %47 = arith.mulf %26, %28 : vector<16x128xf32>
    %cst_22 = arith.constant 0.000000e+00 : f32
    %48 = vector.broadcast %cst_22 : f32 to vector<16x128xf32>
    %49 = arith.select %11, %47, %48 : vector<16x128xi1>, vector<16x128xf32>
    %cst_23 = arith.constant dense<0.000000e+00> : vector<128xf32>
    %50 = vector.multi_reduction <add>, %49, %cst_23 [0] : vector<16x128xf32> to vector<128xf32>
    %51 = vector.shape_cast %50 : vector<128xf32> to vector<1x128xf32>
    %cst_24 = arith.constant 0.000000e+00 : f32
    %52 = vector.broadcast %cst_24 : f32 to vector<1x128xf32>
    %53 = arith.subf %52, %51 : vector<1x128xf32>
    %c0_25 = arith.constant 0 : index
    %c0_26 = arith.constant 0 : index
    %54 = vector.load %arg9[%c0_25, %c0_26] : memref<1x128xf32, #tpu.memory_space<vmem>>, vector<1x128xf32>
    tpu.vector_store %arg9[%c0_25, %c0_26], %53 {strides = array<i32>} : memref<1x128xf32, #tpu.memory_space<vmem>>, vector<1x128xf32>,
    return
  }
  func.func @transform_0(%arg0: i32) -> (i32, i32) {
    %c0_i32 = arith.constant 0 : i32
    %c0_i32_0 = arith.constant 0 : i32
    return %c0_i32, %arg0 : i32, i32
  }
  func.func @transform_1(%arg0: i32) -> (i32, i32) {
    %c0_i32 = arith.constant 0 : i32
    %c0_i32_0 = arith.constant 0 : i32
    %c0_i32_1 = arith.constant 0 : i32
    return %c0_i32, %c0_i32_0 : i32, i32
  }
  func.func @transform_2(%arg0: i32) -> (i32, i32) {
    %c0_i32 = arith.constant 0 : i32
    %c0_i32_0 = arith.constant 0 : i32
    %c0_i32_1 = arith.constant 0 : i32
    return %c0_i32, %c0_i32_0 : i32, i32
  }
  func.func @transform_3(%arg0: i32) -> (i32, i32) {
    %c0_i32 = arith.constant 0 : i32
    %c0_i32_0 = arith.constant 0 : i32
    return %c0_i32, %arg0 : i32, i32
  }
  func.func @transform_4(%arg0: i32) -> (i32, i32) {
    %c0_i32 = arith.constant 0 : i32
    %c0_i32_0 = arith.constant 0 : i32
    return %c0_i32, %arg0 : i32, i32
  }
  func.func @transform_5(%arg0: i32) -> (i32, i32) {
    %c0_i32 = arith.constant 0 : i32
    %c0_i32_0 = arith.constant 0 : i32
    return %c0_i32, %arg0 : i32, i32
  }
  func.func @transform_6(%arg0: i32) -> (i32, i32) {
    %c0_i32 = arith.constant 0 : i32
    %c0_i32_0 = arith.constant 0 : i32
    return %c0_i32, %arg0 : i32, i32
  }
  func.func @transform_7(%arg0: i32) -> (i32, i32) {
    %c0_i32 = arith.constant 0 : i32
    %c0_i32_0 = arith.constant 0 : i32
    return %c0_i32, %arg0 : i32, i32
  }
  func.func @transform_8(%arg0: i32) -> (i32, i32) {
    %c0_i32 = arith.constant 0 : i32
    %c0_i32_0 = arith.constant 0 : i32
    return %c0_i32, %arg0 : i32, i32
  }
}

</mosaic_0001>

<bundles_post_ra>
// kernel: tpu_custom_call.1
= control target key start
LH: loop header
LB: loop body
LE: loop exit
PB: predicated region body
PF: predicated region fallthrough
CT: control target
= control target key end

     0   :  { %14 = vsyncpa [#allocation3], 0  ;;  %s581_s0 = inlined_call_operand.hbm [shape: f32[32,128], index: 0, kind: input, shape index: {}]   ;;  %s582_s1 = inlined_call_operand.vmem [shape: f32[16,32], index: 1, kind: input, shape index: {}]   ;;  %s583_s2 = inlined_call_operand.vmem [shape: f32[16,1], index: 2, kind: input, shape index: {}]   ;;  %s584_s3 = inlined_call_operand.vmem [shape: s32[1,128], index: 3, kind: input, shape index: {}]   ;;  %s585_s4 = inlined_call_operand.hbm [shape: f32[16,128], index: 4, kind: input, shape index: {}]   ;;  %s586_s5 = inlined_call_operand.hbm [shape: s32[1,128], index: 5, kind: output, shape index: {0}]   ;;  %s587_s6 = inlined_call_operand.hbm [shape: f32[16,128], index: 6, kind: output, shape index: {1}]   ;;  %s588_s7 = inlined_call_operand.hbm [shape: f32[1,128], index: 7, kind: output, shape index: {2}]   ;;  %s589_s8 = inlined_call_operand.hbm [shape: f32[1,128], index: 8, kind: output, shape index: {3}]  }
   0x1   :  { %15 = vsyncpa [#allocation6], 0 }
   0x2   :  { %16 = vsyncpa [#allocation4], 0 }
   0x3   :  { %17 = vsyncpa [#allocation9], 0 }
   0x4   :  { %18 = vsyncpa [#allocation12], 0  ;;  %s23_s29 = sshll.u32 %s581_s0, 4  ;;  %s460_s30 = smov [#allocation2]   ;;  %s24_s29 = int_to_ptr.hbm [resolvable:$true] %s23_s29 }
   0x5   :  { %s25_s9 = sshll.u32 %s460_s30, 4  ;;  %s42_s12 = sshll.u32 %s585_s4, 4  ;;  %s26_s9 = int_to_ptr.vmem [resolvable:$true] %s25_s9  ;;  %s43_s12 = int_to_ptr.hbm [resolvable:$true] %s42_s12 }
   0x6   :  { %s461_s13 = smov 128   ;;  %s462_s14 = smov 8  }
   0x7   :  { %31 = dma.hbm_to_vmem [thread:$0]  %s24_s29, 512, %s26_s9, [#allocation3], %s461_s13, %s461_s13, %s462_s14  }
   0x8   :  { %s463_s15 = smov [#allocation5]  }
   0x9   :  { %s44_s16 = sshll.u32 %s463_s15, 4  ;;  %s45_s16 = int_to_ptr.vmem [resolvable:$true] %s44_s16 }
   0xa   :  { %50 = dma.hbm_to_vmem [thread:$0]  %s43_s12, 256, %s45_s16, [#allocation6], %s461_s13, %s461_s13, %s462_s14  }
   0xb   :  { %450 = dma.done.wait [#allocation3], 512  }
   0xc   :  { %451 = vsyncadd [#allocation3], 4294966784 }
   0xd   :  { %452 = dma.done.wait [#allocation6], 256  }
   0xe   :  { %453 = vsyncadd [#allocation6], 4294967040  ;;  %v464_v0 = vmov 0   ;;  %v62_v1 = vld [vmem:[#allocation2 + $0x18] sm:$0xff]  ;;  %v65_v2 = vld [vmem:[%s583_s2] sm:$0xff]  ;;  %vm90_vm0 = vcmask 261120   ;;  %v70_v9 = vlaneseq }
   0xf   :  { %296 = vset.pattern.permute.xlu0 %v464_v0  ;;  %v61_v3 = vld [vmem:[#allocation2 + $0x10] sm:$0xff]  ;;  %109 = vmatpush.msra.mxu0 %v62_v1  ;;  %v60_v4 = vld [vmem:[#allocation2 + $0x8] sm:$0xff]  ;;  %v59_v5 = vld [vmem:[#allocation2] sm:$0xff]  ;;  %s221_s26 = sshll.u32 %s586_s5, 4  ;;  %s466_s5 = smov [#allocation8]   ;;  %s222_s26 = int_to_ptr.hbm [resolvable:$true] %s221_s26 }
  0x10   :  { %283 = vmatpush.msra.mxu1 %v62_v1  ;;  %82 = vperm.xlu0 %296, %v65_v2   ;;  %v63_v6 = vld [vmem:[%s582_s1] sm:$0xff]  ;;  %v64_v7 = vld [vmem:[%s582_s1 + $0x8] sm:$0xff]  ;;  %v538_v10 = vshrl.u32 %v70_v9, 7  ;;  %s465_s1 = smov [#allocation7]   ;;  %s229_s27 = sshll.u32 %s466_s5, 4  ;;  %s230_s27 = int_to_ptr.vmem [resolvable:$true] %s229_s27 }
  0x11   :  { %110 = vmatpush.msra.mxu0 %v61_v3  ;;  %v66_v8 = vld [vmem:[%s583_s2 + $0x8] sm:$0xff]  ;;  %v297_v11 = vld [vmem:[%s584_s3] ss:$0 sm:$0xff]  ;;  %s219_s2 = sshll.u32 %s465_s1, 4  ;;  %s231_s30 = sshll.u32 %s587_s6, 4  ;;  %s220_s2 = int_to_ptr.vmem [resolvable:$true] %s219_s2  ;;  %s232_s30 = int_to_ptr.hbm [resolvable:$true] %s231_s30 }
  0x12   :  { %284 = vmatpush.msra.mxu1 %v61_v3  ;;  %v544_v12 = vadd.s32 8, %v538_v10  ;;  %v74_v14 = vshra.s32 %v297_v11, %v538_v10  ;;  %v68_v21 = vld [vmem:[#allocation5] sm:$0xff]  ;;  %v69_v23 = vld [vmem:[#allocation5 + $0x8] sm:$0xff]  ;;  %s467_s9 = smov [#allocation10]   ;;  %s245_s15 = sshll.u32 %s588_s7, 4  ;;  %s246_s15 = int_to_ptr.hbm [resolvable:$true] %s245_s15 }
  0x13   :  { %111 = vmatpush.msra.mxu0 %v60_v4  ;;  %s243_s10 = sshll.u32 %s467_s9, 4  ;;  %s468_s6 = smov [#allocation11]   ;;  %s244_s10 = int_to_ptr.vmem [resolvable:$true] %s243_s10 }
  0x14   :  { %285 = vmatpush.msra.mxu1 %v60_v4  ;;  %v75_v15 = vshra.s32 %v297_v11, %v544_v12  ;;  %v548_v16 = vand.u32 1, %v74_v14  ;;  %s254_s7 = sshll.u32 %s468_s6, 4  ;;  %s256_s4 = sshll.u32 %s589_s8, 4  ;;  %s255_s7 = int_to_ptr.vmem [resolvable:$true] %s254_s7  ;;  %s257_s4 = int_to_ptr.hbm [resolvable:$true] %s256_s4 }
  0x15   :  { %112 = vmatpush.msra.mxu0 %v59_v5 }
  0x16   :  { %286 = vmatpush.msra.mxu1 %v59_v5  ;;  %281 = vmatmul.msk.f32.vlgmr.msra.gmra.mxu0 %vm90_vm0, %v63_v6  ;;  %v550_v17 = vand.u32 1, %v75_v15  ;;  %vm78_vm1 = vcmp.ne.s32.totalorder %v548_v16, 0 }
  0x17   :  { %282 = vmatmul.msk.f32.vlgmr.msra.gmra.mxu1 %vm90_vm0, %v64_v7 }
  0x18   :  { %87 = vperm.xlu0 %296, %v66_v8   ;;  %vm79_vm2 = vcmp.ne.s32.totalorder %v550_v17, 0 }
  0x82   :  { %v83_v13 = vpop.permute.xlu0 %82 }
  0x8a   :  { %v88_v18 = vpop.permute.xlu0 %87 }
  0x93   :  { %v114_v19 = vpop.f32.mrf.mxu0 }
  0x94   :  { %v117_v20 = vpop.f32.mrf.mxu1  ;;  %v115_v22 = vadd.f32 %v114_v19, %v83_v13 }
  0x95   :  { %v118_v24 = vadd.f32 %v117_v20, %v88_v18 }
  0x96   :  { %v120_v25 = vsel %vm78_vm1, %v115_v22, -1e+30 }
  0x97   :  { %v121_v26 = vsel %vm79_vm2, %v118_v24, -1e+30  ;;  %v164_v27 = vadd.f32 %v120_v25, %v68_v21 }
  0x98   :  { %v122_v28 = vmax.f32 %v120_v25, %v121_v26  ;;  %v165_v29 = vadd.f32 %v121_v26, %v69_v23 }
  0x9a   :  { %v123_v30 = vrot.slane %v122_v28, 4  ;;  %v166_v31 = vmax.f32 %v164_v27, %v165_v29 }
  0x9c   :  { %v124_v32 = vmax.f32 %v122_v28, %v123_v30  ;;  %v167_v33 = vrot.slane %v166_v31, 4 }
  0x9e   :  { %v125_v34 = vrot.slane %v124_v32, 2  ;;  %v168_v35 = vmax.f32 %v166_v31, %v167_v33 }
  0xa0   :  { %v126_v36 = vmax.f32 %v124_v32, %v125_v34  ;;  %v169_v37 = vrot.slane %v168_v35, 2 }
  0xa2   :  { %v127_v38 = vrot.slane %v126_v36, 1  ;;  %v170_v39 = vmax.f32 %v168_v35, %v169_v37 }
  0xa4   :  { %v128_v40 = vmax.f32 %v126_v36, %v127_v38  ;;  %v171_v41 = vrot.slane %v170_v39, 1 }
  0xa6   :  { %v129_v42 = vsub.f32 %v120_v25, %v128_v40  ;;  %v130_v43 = vsub.f32 %v121_v26, %v128_v40  ;;  %v172_v44 = vmax.f32 %v170_v39, %v171_v41 }
  0xa8   :  { %v131_v45 = vmul.f32 1.442695, %v129_v42  ;;  %v133_v46 = vmul.f32 1.442695, %v130_v43  ;;  %vm173_vm3 = vcmp.eq.f32.partialorder %v164_v27, %v172_v44  ;;  %vm174_vm4 = vcmp.eq.f32.partialorder %v165_v29, %v172_v44 }
  0xa9   :  { %v175_v47 = vsel %vm173_vm3, %v538_v10, 16  ;;  %v176_v48 = vsel %vm174_vm4, %v544_v12, 16 }
  0xaa   :  { %298 = vpow2.f32 %v131_v45  ;;  %vm177_vm5 = vcmp.lt.s32.totalorder %v175_v47, %v176_v48 }
  0xab   :  { %300 = vpow2.f32 %v133_v46  ;;  %v178_v49 = vsel %vm177_vm5, %v175_v47, %v176_v48 }
  0xac   :  { %v179_v50 = vrot.slane %v178_v49, 4 }
  0xae   :  { %vm180_vm6 = vcmp.lt.s32.totalorder %v178_v49, %v179_v50 }
  0xaf   :  { %v181_v51 = vsel %vm180_vm6, %v178_v49, %v179_v50 }
  0xb0   :  { %v299_v52 = vpop.eup %298  ;;  %v182_v53 = vrot.slane %v181_v51, 2 }
  0xb1   :  { %v301_v54 = vpop.eup %300 }
  0xb2   :  { %v135_v55 = vadd.f32 %v301_v54, %v299_v52  ;;  %vm183_vm7 = vcmp.lt.s32.totalorder %v181_v51, %v182_v53 }
  0xb3   :  { %v184_v56 = vsel %vm183_vm7, %v181_v51, %v182_v53 }
  0xb4   :  { %v136_v57 = vrot.slane %v135_v55, 4  ;;  %v185_v58 = vrot.slane %v184_v56, 1 }
  0xb6   :  { %v137_v59 = vadd.f32 %v136_v57, %v135_v55  ;;  %vm186_vm8 = vcmp.lt.s32.totalorder %v184_v56, %v185_v58 }
  0xb7   :  { %v187_v60 = vsel %vm186_vm8, %v184_v56, %v185_v58 }
  0xb8   :  { %v138_v61 = vrot.slane %v137_v59, 2  ;;  %188 = vst [vmem:[#allocation7] sm:$0x1] %v187_v60  ;;  %vm189_vm9 = vcmp.eq.s32.totalorder %v538_v10, %v187_v60  ;;  %vm190_vm10 = vcmp.eq.s32.totalorder %v544_v12, %v187_v60 }
  0xb9   :  { %224 = dma.vmem_to_hbm [thread:$0]  %s220_s2, 16, %s222_s26, [#allocation4]  }
  0xba   :  { %v139_v62 = vadd.f32 %v138_v61, %v137_v59 }
  0xbc   :  { %v140_v63 = vrot.slane %v139_v62, 1 }
  0xbe   :  { %v141_v0 = vadd.f32 %v140_v63, %v139_v62 }
  0xc0   :  { %302 = vlog2.f32 %v141_v0  ;;  %v157_v8 = vand.u32 2147483648, %v141_v0  ;;  %v155_v14 = vand.u32 2147483647, %v141_v0  ;;  %vm151_vm12 = vweird.f32 %v141_v0 }
  0xc1   :  { %304 = vrcp.f32 %v141_v0 }
  0xc2   :  { %v158_v20 = vor.u32 1.1754944e-38, %v157_v8  ;;  %vm156_vm14 = vcmp.eq.f32.partialorder %v155_v14, 8.507059e+37 }
  0xc6   :  { %v303_v1 = vpop.eup %302 }
  0xc7   :  { %v305_v2 = vpop.eup %304  ;;  %v143_v3 = vmul.f32 0.6931472, %v303_v1 }
  0xc8   :  { %v147_v4 = vmul.f32 %v305_v2, %v141_v0  ;;  %vm152_vm11 = vweird.f32 %v305_v2 }
  0xc9   :  { %v144_v5 = vsub.f32 %v129_v42, %v143_v3  ;;  %v145_v6 = vsub.f32 %v130_v43, %v143_v3  ;;  %vm153_vm13 = vmor %vm151_vm12, %vm152_vm11 }
  0xca   :  { %v148_v7 = vsub.f32 1.0, %v147_v4 }
  0xcb   :  { %v191_v9 = vsel %vm189_vm9, %v144_v5, 0.0  ;;  %v192_v11 = vsel %vm190_vm10, %v145_v6, 0.0 }
  0xcc   :  { %v149_v13 = vmul.f32 %v305_v2, %v148_v7  ;;  %v193_v15 = vadd.f32 %v192_v11, %v191_v9 }
  0xce   :  { %v150_v18 = vadd.f32 %v305_v2, %v149_v13  ;;  %v194_v19 = vrot.slane %v193_v15, 4 }
  0xd0   :  { %v154_v21 = vsel %vm153_vm13, %v305_v2, %v150_v18  ;;  %v195_v10 = vadd.f32 %v194_v19, %v193_v15 }
  0xd1   :  { %v159_v12 = vsel %vm156_vm14, %v158_v20, %v154_v21 }
  0xd2   :  { %v160_v22 = vmul.f32 %v299_v52, %v159_v12  ;;  %v161_v23 = vmul.f32 %v301_v54, %v159_v12  ;;  %v196_v24 = vrot.slane %v195_v10, 2 }
  0xd4   :  { %v201_v25 = vmul.f32 %v160_v22, %v144_v5  ;;  %v202_v26 = vmul.f32 %v161_v23, %v145_v6  ;;  %162 = vst [vmem:[#allocation8] sm:$0xff] %v160_v22  ;;  %v197_v27 = vadd.f32 %v196_v24, %v195_v10 }
  0xd5   :  { %163 = vst [vmem:[#allocation8 + $0x8] sm:$0xff] %v161_v23 }
  0xd6   :  { %v203_v28 = vsel %vm78_vm1, %v201_v25, 0.0  ;;  %v204_v29 = vsel %vm79_vm2, %v202_v26, 0.0  ;;  %237 = dma.vmem_to_hbm [thread:$0]  %s230_s27, 256, %s232_s30, [#allocation9], %s461_s13, %s461_s13, %s462_s14   ;;  %v198_v30 = vrot.slane %v197_v27, 1 }
  0xd7   :  { %v205_v31 = vadd.f32 %v204_v29, %v203_v28 }
  0xd8   :  { %v199_v32 = vadd.f32 %v198_v30, %v197_v27 }
  0xd9   :  { %v206_v33 = vrot.slane %v205_v31, 4 }
  0xda   :  { %200 = vst [vmem:[#allocation10] sm:$0x1] %v199_v32 }
  0xdb   :  { %v207_v34 = vadd.f32 %v206_v33, %v205_v31  ;;  %248 = dma.vmem_to_hbm [thread:$0]  %s244_s10, 16, %s246_s15, [#allocation9]  }
  0xdd   :  { %v208_v35 = vrot.slane %v207_v34, 2 }
  0xdf   :  { %v209_v36 = vadd.f32 %v208_v35, %v207_v34 }
  0xe1   :  { %v210_v16 = vrot.slane %v209_v36, 1 }
  0xe3   :  { %v211_v17 = vadd.f32 %v210_v16, %v209_v36 }
  0xe5   :  { %v212_v37 = vsub.f32 0.0, %v211_v17 }
  0xe7   :  { %213 = vst [vmem:[#allocation11] sm:$0x1] %v212_v37 }
  0xe8   :  { %259 = dma.vmem_to_hbm [thread:$0]  %s255_s7, 16, %s257_s4, [#allocation12]  }
  0xe9   :  { %454 = dma.done.wait [#allocation4], 16  }
  0xea   :  { %455 = vsyncadd [#allocation4], 4294967280 }
  0xeb   :  { %456 = dma.done.wait [#allocation9], 272  }
  0xec   :  { %457 = vsyncadd [#allocation9], 4294967024 }
  0xed   :  { %458 = dma.done.wait [#allocation12], 16  }
  0xee   :  { %459 = vsyncadd [#allocation12], 4294967280 }
  0xef   :  { %276 = vsyncpa [#allocation3], 1 }
  0xf0   :  { %277 = vsyncpa [#allocation6], 1 }
  0xf1   :  { %278 = vsyncpa [#allocation4], 1 }
  0xf2   :  { %279 = vsyncpa [#allocation9], 1 }
  0xf3   :  { %280 = vsyncpa [#allocation12], 1 }

</bundles_post_ra>
